<compile_context>
chip_gen: v7x
topology: tpu7x:2x2x1
jax: 0.10.0
libtpu: 0.0.40
codegen_flags: <defaults>
</compile_context>

<pallas_src>
import jax
import jax.numpy as jnp
from jax.experimental import pallas as pl
from jax.experimental.pallas import tpu as pltpu


def _round_up(x, m):
    return (x + m - 1) // m * m


def pnet_kernel(x_ref, w1_ref, b1_ref, w23_ref, b23_ref, o_ref):
    # lin1 + relu (eval-mode dropout = identity)
    h1 = jnp.dot(x_ref[...], w1_ref[...],
                 preferred_element_type=jnp.float32) + b1_ref[...]
    h1 = jnp.maximum(h1, 0.0)
    # folded lin2+lin3 (no nonlinearity between them; eval dropout = identity)
    h3 = jnp.dot(h1, w23_ref[...],
                 preferred_element_type=jnp.float32) + b23_ref[...]
    # sigmoid via a single EUP transcendental: sigmoid(x) = 0.5*tanh(0.5*x)+0.5
    o_ref[...] = 0.5 * jnp.tanh(0.5 * h3) + 0.5


def prepare_params(params):
    """Fold lin2/lin3 into one matmul (valid in eval mode only)."""
    w1, b1 = params["w1"], params["b1"]
    w2, b2 = params["w2"], params["b2"]
    w3, b3 = params["w3"], params["b3"]
    w23 = w2 @ w3                       # (N, X_dim)
    b23 = b2 @ w3 + b3                  # (1, X_dim)
    return {"w1": w1, "b1": b1, "w23": w23, "b23": b23}


def p_net_forward(x, fused, tb=4096):
    """x: (B, z_dim) f32 -> (B, X_dim) f32, eval-mode forward of P_net."""
    B, z_dim = x.shape
    N = fused["w1"].shape[1]
    X_dim = fused["w23"].shape[1]

    # Batch tile: even split of B over the grid (avoids ~2x padding blow-up),
    # rounded up to an f32 sublane group (8 rows). When B is large enough,
    # force >=2 grid steps so the "parallel" axis can shard across v7x's 2 TCs.
    min_steps = 2 if B >= 16 else 1
    steps = max(pl.cdiv(B, tb), min_steps)
    TB = _round_up(pl.cdiv(B, steps), 8)
    steps = pl.cdiv(B, TB)
    B_pad = TB * steps
    if B_pad != B:
        x = jnp.pad(x, ((0, B_pad - B), (0, 0)))
    grid = (steps,)

    cost = pl.CostEstimate(
        flops=2 * B_pad * (z_dim * N + N * X_dim) + 2 * B_pad * (N + X_dim),
        transcendentals=B_pad * X_dim,                    # one tanh per element
        bytes_accessed=4 * (B_pad * z_dim + B_pad * X_dim
                            + z_dim * N + N + N * X_dim + X_dim),
    )

    out = pl.pallas_call(
        pnet_kernel,
        out_shape=jax.ShapeDtypeStruct((B_pad, X_dim), jnp.float32),
        grid=grid,
        in_specs=[
            pl.BlockSpec((TB, z_dim), lambda i: (i, 0)),   # x: tiled over batch
            pl.BlockSpec((z_dim, N), lambda i: (0, 0)),    # weights: resident
            pl.BlockSpec((1, N), lambda i: (0, 0)),
            pl.BlockSpec((N, X_dim), lambda i: (0, 0)),
            pl.BlockSpec((1, X_dim), lambda i: (0, 0)),
        ],
        out_specs=pl.BlockSpec((TB, X_dim), lambda i: (i, 0)),
        compiler_params=pltpu.CompilerParams(
            dimension_semantics=("parallel",),          # v7x: split across TCs
            vmem_limit_bytes=48 * 1024 * 1024,          # fits v7x 64 MiB VMEM
        ),
        cost_estimate=cost,
    )(x, fused["w1"], fused["b1"], fused["w23"], fused["b23"])

    if B_pad != B:
        out = out[:B]
    return out


def init_params(key, z_dim=6, N=32, X_dim=28):
    """Deterministic init mimicking nn.Linear default uniform(-1/sqrt(fan_in), +)."""
    def linear(key, fan_in, fan_out):
        kw, kb = jax.random.split(key)
        bound = 1.0 / jnp.sqrt(float(fan_in))
        w = jax.random.uniform(kw, (fan_in, fan_out), jnp.float32, -bound, bound)
        b = jax.random.uniform(kb, (1, fan_out), jnp.float32, -bound, bound)
        return w, b

    k1, k2, k3 = jax.random.split(key, 3)
    w1, b1 = linear(k1, z_dim, N)
    w2, b2 = linear(k2, N, N)
    w3, b3 = linear(k3, N, X_dim)
    return {"w1": w1, "b1": b1, "w2": w2, "b2": b2, "w3": w3, "b3": b3}


def p_net_reference(x, p):
    """Pure-JAX reference (unfused, exact sigmoid) for correctness check."""
    h1 = jnp.maximum(x @ p["w1"] + p["b1"], 0.0)
    h2 = h1 @ p["w2"] + p["b2"]
    h3 = h2 @ p["w3"] + p["b3"]
    return jax.nn.sigmoid(h3)


if __name__ == "__main__":
    key = jax.random.PRNGKey(0)
    kx, kp = jax.random.split(key)

    B, z_dim, N, X_dim = 8, 6, 32, 28
    x = jax.random.normal(kx, (B, z_dim), jnp.float32)
    params = init_params(kp, z_dim=z_dim, N=N, X_dim=X_dim)
    fused = prepare_params(params)

    out = p_net_forward(x, fused)
    out = jax.block_until_ready(out)

    ref = p_net_reference(x, params)
    assert out.shape == (B, X_dim), out.shape
    # Exact tanh-based sigmoid; only the lin2/lin3 fold changes rounding order.
    assert jnp.allclose(out, ref, atol=1e-5, rtol=1e-5), "mismatch vs reference"

    print("KERNEL_OK")
</pallas_src>

<mosaic_0001>
module attributes {stable_mosaic.version = 11 : i64} {
  func.func @pnet_kernel(%arg0: i32, %arg1: memref<8x6xf32, #tpu.memory_space<vmem>>, %arg2: memref<6x32xf32, #tpu.memory_space<vmem>>, %arg3: memref<1x32xf32, #tpu.memory_space<vmem>>, %arg4: memref<32x28xf32, #tpu.memory_space<vmem>>, %arg5: memref<1x28xf32, #tpu.memory_space<vmem>>, %arg6: memref<8x28xf32, #tpu.memory_space<vmem>>) attributes {dimension_semantics = [#tpu.dimension_semantics<parallel>], iteration_bounds = array<i64: 1>, scalar_prefetch = 0 : i64, scratch_operands = 0 : i64, tpu.core_type = #tpu.core_type<tc>, window_params = [{transform_indices = @transform_0, window_bounds = array<i64: 8, 6>}, {pipeline_mode = #tpu.pipeline_mode<synchronous>, transform_indices = @transform_1, window_bounds = array<i64: 6, 32>}, {pipeline_mode = #tpu.pipeline_mode<synchronous>, transform_indices = @transform_2, window_bounds = array<i64: 1, 32>}, {pipeline_mode = #tpu.pipeline_mode<synchronous>, transform_indices = @transform_3, window_bounds = array<i64: 32, 28>}, {pipeline_mode = #tpu.pipeline_mode<synchronous>, transform_indices = @transform_4, window_bounds = array<i64: 1, 28>}, {transform_indices = @transform_5, window_bounds = array<i64: 8, 28>}]} {
    %c0 = arith.constant 0 : index
    %c0_0 = arith.constant 0 : index
    %0 = vector.load %arg1[%c0, %c0_0] : memref<8x6xf32, #tpu.memory_space<vmem>>, vector<8x6xf32>
    %c0_1 = arith.constant 0 : index
    %c0_2 = arith.constant 0 : index
    %1 = vector.load %arg2[%c0_1, %c0_2] : memref<6x32xf32, #tpu.memory_space<vmem>>, vector<6x32xf32>
    %cst = arith.constant dense<0.000000e+00> : vector<8x32xf32>
    %2 = tpu.matmul %0, %1, %cst {dimension_numbers = #tpu.dot_dimension_numbers<[1], [0], [0], [1], [0, 0, 1, 1], [], []>} : vector<8x6xf32>, vector<6x32xf32>, vector<8x32xf32> -> vector<8x32xf32>
    %c0_3 = arith.constant 0 : index
    %c0_4 = arith.constant 0 : index
    %3 = vector.load %arg3[%c0_3, %c0_4] : memref<1x32xf32, #tpu.memory_space<vmem>>, vector<1x32xf32>
    %4 = vector.broadcast %3 : vector<1x32xf32> to vector<8x32xf32>
    %5 = arith.addf %2, %4 : vector<8x32xf32>
    %cst_5 = arith.constant 0.000000e+00 : f32
    %6 = vector.broadcast %cst_5 : f32 to vector<8x32xf32>
    %7 = arith.maximumf %5, %6 : vector<8x32xf32>
    %c0_6 = arith.constant 0 : index
    %c0_7 = arith.constant 0 : index
    %8 = vector.load %arg4[%c0_6, %c0_7] : memref<32x28xf32, #tpu.memory_space<vmem>>, vector<32x28xf32>
    %cst_8 = arith.constant dense<0.000000e+00> : vector<8x28xf32>
    %9 = tpu.matmul %7, %8, %cst_8 {dimension_numbers = #tpu.dot_dimension_numbers<[1], [0], [0], [1], [0, 0, 1, 1], [], []>} : vector<8x32xf32>, vector<32x28xf32>, vector<8x28xf32> -> vector<8x28xf32>
    %c0_9 = arith.constant 0 : index
    %c0_10 = arith.constant 0 : index
    %10 = vector.load %arg5[%c0_9, %c0_10] : memref<1x28xf32, #tpu.memory_space<vmem>>, vector<1x28xf32>
    %11 = vector.broadcast %10 : vector<1x28xf32> to vector<8x28xf32>
    %12 = arith.addf %9, %11 : vector<8x28xf32>
    %cst_11 = arith.constant 5.000000e-01 : f32
    %13 = vector.broadcast %cst_11 : f32 to vector<8x28xf32>
    %14 = arith.mulf %13, %12 : vector<8x28xf32>
    %15 = math.tanh %14 : vector<8x28xf32>
    %cst_12 = arith.constant 5.000000e-01 : f32
    %16 = vector.broadcast %cst_12 : f32 to vector<8x28xf32>
    %17 = arith.mulf %16, %15 : vector<8x28xf32>
    %cst_13 = arith.constant 5.000000e-01 : f32
    %18 = vector.broadcast %cst_13 : f32 to vector<8x28xf32>
    %19 = arith.addf %17, %18 : vector<8x28xf32>
    %c0_14 = arith.constant 0 : index
    %c0_15 = arith.constant 0 : index
    %20 = vector.load %arg6[%c0_14, %c0_15] : memref<8x28xf32, #tpu.memory_space<vmem>>, vector<8x28xf32>
    tpu.vector_store %arg6[%c0_14, %c0_15], %19 {strides = array<i32>} : memref<8x28xf32, #tpu.memory_space<vmem>>, vector<8x28xf32>,
    return
  }
  func.func @transform_0(%arg0: i32) -> (i32, i32) {
    %c0_i32 = arith.constant 0 : i32
    %c0_i32_0 = arith.constant 0 : i32
    return %arg0, %c0_i32 : i32, i32
  }
  func.func @transform_1(%arg0: i32) -> (i32, i32) {
    %c0_i32 = arith.constant 0 : i32
    %c0_i32_0 = arith.constant 0 : i32
    %c0_i32_1 = arith.constant 0 : i32
    return %c0_i32, %c0_i32_0 : i32, i32
  }
  func.func @transform_2(%arg0: i32) -> (i32, i32) {
    %c0_i32 = arith.constant 0 : i32
    %c0_i32_0 = arith.constant 0 : i32
    %c0_i32_1 = arith.constant 0 : i32
    return %c0_i32, %c0_i32_0 : i32, i32
  }
  func.func @transform_3(%arg0: i32) -> (i32, i32) {
    %c0_i32 = arith.constant 0 : i32
    %c0_i32_0 = arith.constant 0 : i32
    %c0_i32_1 = arith.constant 0 : i32
    return %c0_i32, %c0_i32_0 : i32, i32
  }
  func.func @transform_4(%arg0: i32) -> (i32, i32) {
    %c0_i32 = arith.constant 0 : i32
    %c0_i32_0 = arith.constant 0 : i32
    %c0_i32_1 = arith.constant 0 : i32
    return %c0_i32, %c0_i32_0 : i32, i32
  }
  func.func @transform_5(%arg0: i32) -> (i32, i32) {
    %c0_i32 = arith.constant 0 : i32
    %c0_i32_0 = arith.constant 0 : i32
    return %arg0, %c0_i32 : i32, i32
  }
}

</mosaic_0001>

<bundles_post_ra>
// kernel: tpu_custom_call.1
= control target key start
LH: loop header
LB: loop body
LE: loop exit
PB: predicated region body
PF: predicated region fallthrough
CT: control target
= control target key end

     0   :  { %10 = vsyncpa [#allocation3], 0  ;;  %s485_s0 = inlined_call_operand.hbm [shape: f32[8,6], index: 0, kind: input, shape index: {}]   ;;  %s486_s1 = inlined_call_operand.hbm [shape: f32[6,32], index: 1, kind: input, shape index: {}]   ;;  %s487_s2 = inlined_call_operand.vmem [shape: f32[1,32], index: 2, kind: input, shape index: {}]   ;;  %s488_s3 = inlined_call_operand.hbm [shape: f32[32,28], index: 3, kind: input, shape index: {}]   ;;  %s489_s4 = inlined_call_operand.vmem [shape: f32[1,28], index: 4, kind: input, shape index: {}]   ;;  %s490_s5 = inlined_call_operand.hbm [shape: f32[8,28], index: 5, kind: output, shape index: {}]  }
   0x1   :  { %11 = vsyncpa [#allocation6], 0 }
   0x2   :  { %12 = vsyncpa [#allocation4], 0  ;;  %s392_s18 = smov [#allocation5]   ;;  %s393_s20 = smov [#allocation2]  }
   0x3   :  { %s29_s19 = sshll.u32 %s392_s18, 4  ;;  %s19_s21 = sshll.u32 %s393_s20, 4  ;;  %s30_s19 = int_to_ptr.vmem [resolvable:$true] %s29_s19  ;;  %s20_s21 = int_to_ptr.vmem [resolvable:$true] %s19_s21 }
   0x4   :  { %s298_s24 = scalar_lea.hbm %s486_s1, 128 }
   0x5   :  { %p299_p0 = scmp.ne.s32.totalorder %s486_s1, %s298_s24  ;;  %p302_p1 = scmp.lt.u32.totalorder %s298_s24, %s486_s1 }
   0x7   :  { %p304_p2 = pnand %p302_p1, %p299_p0 }
   0x9   :  { %307 = shalt.err (!%p304_p2)
}
   0xa   :  { %s308_s29 = scalar_lea.vmem %s30_s19, 128  ;;  %p313_p4 = scmp.lt.s32.totalorder %s30_s19, %s30_s19 }
   0xb   :  { %p309_p3 = scmp.ne.s32.totalorder %s30_s19, %s308_s29  ;;  %p314_p5 = scmp.lt.s32.totalorder %s308_s29, %s308_s29 }
   0xd   :  { %p315_p6 = por %p314_p5, %p313_p4 }
   0xf   :  { %p316_p7 = pnand %p315_p6, %p309_p3 }
  0x11   :  { %319 = shalt.err (!%p316_p7)
}
  0x12   :  { %32 = dma.hbm_to_vmem [thread:$0]  %s486_s1, 128, %s30_s19, [#allocation6]  }
  0x13   :  { %s320_s9 = scalar_lea.hbm %s485_s0, 128 }
  0x14   :  { %p321_p8 = scmp.ne.s32.totalorder %s485_s0, %s320_s9  ;;  %p324_p9 = scmp.lt.u32.totalorder %s320_s9, %s485_s0 }
  0x16   :  { %p326_p10 = pnand %p324_p9, %p321_p8 }
  0x18   :  { %329 = shalt.err (!%p326_p10)
}
  0x19   :  { %s330_s14 = scalar_lea.vmem %s20_s21, 128  ;;  %p335_p12 = scmp.lt.s32.totalorder %s20_s21, %s20_s21 }
  0x1a   :  { %p331_p11 = scmp.ne.s32.totalorder %s20_s21, %s330_s14  ;;  %p336_p13 = scmp.lt.s32.totalorder %s330_s14, %s330_s14 }
  0x1c   :  { %p337_p0 = por %p336_p13, %p335_p12 }
  0x1e   :  { %p338_p1 = pnand %p337_p0, %p331_p11 }
  0x20   :  { %341 = shalt.err (!%p338_p1)
}
  0x21   :  { %22 = dma.hbm_to_vmem [thread:$0]  %s485_s0, 128, %s20_s21, [#allocation3]  }
  0x22   :  { %s394_s16 = smov [#allocation7]   ;;  %s342_s20 = scalar_lea.hbm %s488_s3, 512 }
  0x23   :  { %s40_s17 = sshll.u32 %s394_s16, 4  ;;  %p343_p2 = scmp.ne.s32.totalorder %s488_s3, %s342_s20  ;;  %s41_s17 = int_to_ptr.vmem [resolvable:$true] %s40_s17 }
  0x24   :  { %p346_p3 = scmp.lt.u32.totalorder %s342_s20, %s488_s3 }
  0x26   :  { %p348_p4 = pnand %p346_p3, %p343_p2 }
  0x28   :  { %351 = shalt.err (!%p348_p4)
}
  0x29   :  { %s352_s26 = scalar_lea.vmem %s41_s17, 512  ;;  %p357_p6 = scmp.lt.s32.totalorder %s41_s17, %s41_s17 }
  0x2a   :  { %p353_p5 = scmp.ne.s32.totalorder %s41_s17, %s352_s26  ;;  %p358_p7 = scmp.lt.s32.totalorder %s352_s26, %s352_s26 }
  0x2c   :  { %p359_p8 = por %p358_p7, %p357_p6 }
  0x2e   :  { %p360_p9 = pnand %p359_p8, %p353_p5 }
  0x30   :  { %363 = shalt.err (!%p360_p9)
}
  0x31   :  { %s395_s0 = smov 128   ;;  %s396_s21 = smov 8  }
  0x32   :  { %46 = dma.hbm_to_vmem [thread:$0]  %s488_s3, 512, %s41_s17, [#allocation6], %s395_s0, %s395_s0, %s396_s21  }
  0x33   :  { %386 = dma.done.wait [#allocation3], 128  }
  0x34   :  { %387 = vsyncadd [#allocation3], 4294967168 }
  0x35   :  { %388 = dma.done.wait [#allocation6], 640  }
  0x36   :  { %389 = vsyncadd [#allocation6], 4294966656  ;;  %v397_v0 = vmov 0.0   ;;  %vm398_vm0 = vmmov 0   ;;  %v399_v1 = vmov 0.0|0.0   ;;  %vm71_vm1 = vcmask 1045504  }
  0x37   :  { %265 = vmatprep.subr.mxu0 %v397_v0  ;;  %267 = vmatprep.mubr.msk.f32.mxu0 %vm398_vm0, %v397_v0  ;;  %vm67_vm2 = vcmask 48128   ;;  %v59_v2 = vld [vmem:[#allocation5] sm:$0x3f]  ;;  %v58_v3 = vld [vmem:[#allocation2] sm:$0xff]  ;;  %v146_v4 = vld [vmem:[#allocation7] sm:$0xff]  ;;  %vm157_vm3 = vcmask 261120  }
  0x38   :  { %281 = vmatprep.subr.bf16.mxu1 %v399_v1  ;;  %278 = vmatprep.mubr.msk.f32.mxu1 %vm398_vm0, %v397_v0  ;;  %v147_v5 = vld [vmem:[#allocation7 + $0x8] sm:$0xff]  ;;  %v148_v7 = vld [vmem:[#allocation7 + $0x10] sm:$0xff]  ;;  %v149_v8 = vld [vmem:[#allocation7 + $0x18] sm:$0xff]  ;;  %s400_s7 = smov [#allocation8]   ;;  %vm235_vm4 = vcmask 228352  }
  0x39   :  { %266 = vmatpush3.msk.msra.mxu0 %vm71_vm1, %v59_v2  ;;  %v282_v6 = vpack.c.bf16 %v147_v5, %v146_v4  ;;  %v285_v9 = vpack.c.bf16 %v149_v8, %v148_v7  ;;  %v253_v10 = vld [vmem:[%s487_s2] ss:$0 sm:$0xff]  ;;  %s243_s8 = sshll.u32 %s400_s7, 4  ;;  %s244_s8 = int_to_ptr.vmem [resolvable:$true] %s243_s8 }
  0x3a   :  { %268 = vmatmul.mubr.msk.f32.vlgmr.msra.gmra.mrb[0].mxu0 %vm67_vm2, %v58_v3  ;;  %v256_v15 = vld [vmem:[%s489_s4] ss:$0 sm:$0xff]  ;;  %s364_s2 = scalar_lea.vmem %s244_s8, 128  ;;  %p369_p11 = scmp.lt.s32.totalorder %s244_s8, %s244_s8 }
  0x3b   :  { %283 = vmatpush3.bf16.msra.mxu1 %v282_v6  ;;  %p365_p10 = scmp.ne.s32.totalorder %s244_s8, %s364_s2  ;;  %p370_p12 = scmp.lt.s32.totalorder %s364_s2, %s364_s2 }
  0x3c   :  { %284 = vmatprep.subr.bf16.mxu1 %v399_v1 }
  0x3d   :  { %p371_p13 = por %p370_p12, %p369_p11 }
  0x3f   :  { %286 = vmatpush3.bf16.msra.mxu1 %v285_v9  ;;  %p372_p0 = pnand %p371_p13, %p365_p10 }
 0x10d   :  { %v141_v11 = vpop.f32.mrb[0].mxu0 }
 0x10e   :  { %v142_v12 = vadd.f32 %v253_v10, %v141_v11  ;;  %v269_v13 = vpop.f32.mrb[1].mxu0 }
 0x110   :  { %v145_v14 = vmax.f32 %v142_v12, 0.0 }
 0x112   :  { %279 = vmatmul.mubr.msk.f32.vlgmr.msra.gmra.mrb[0].mxu1 %vm157_vm3, %v145_v14 }
 0x1e5   :  { %v227_v16 = vpop.f32.mrb[0].mxu1 }
 0x1e6   :  { %v228_v17 = vadd.f32 %v256_v15, %v227_v16  ;;  %v280_v18 = vpop.f32.mrb[1].mxu1 }
 0x1e8   :  { %v231_v19 = vmul.f32 0.5, %v228_v17 }
 0x1ea   :  { %296 = vtanh.f32 %v231_v19 }
 0x1f4   :  { %v297_v20 = vpop.eup %296 }
 0x1f5   :  { %v233_v21 = vmul.f32 0.5, %v297_v20 }
 0x1f7   :  { %v234_v22 = vadd.f32 0.5, %v233_v21 }
 0x1f9   :  { %236 = vst.msk [vmem:[#allocation8] sm:$0xff] %vm235_vm4, %v234_v22 }
 0x1fa   :  { %375 = shalt.err (!%p372_p0)
}
 0x1fb   :  { %s376_s10 = scalar_lea.hbm %s490_s5, 128 }
 0x1fc   :  { %p377_p1 = scmp.ne.s32.totalorder %s490_s5, %s376_s10  ;;  %p380_p2 = scmp.lt.u32.totalorder %s376_s10, %s490_s5 }
 0x1fe   :  { %p382_p3 = pnand %p380_p2, %p377_p1 }
 0x200   :  { %385 = shalt.err (!%p382_p3)
}
 0x201   :  { %246 = dma.vmem_to_hbm [thread:$0]  %s244_s8, 128, %s490_s5, [#allocation4]  }
 0x202   :  { %390 = dma.done.wait [#allocation4], 128  }
 0x203   :  { %391 = vsyncadd [#allocation4], 4294967168 }
 0x204   :  { %250 = vsyncpa [#allocation3], 1 }
 0x205   :  { %251 = vsyncpa [#allocation6], 1 }
 0x206   :  { %252 = vsyncpa [#allocation4], 1 }

</bundles_post_ra>
